<compile_context>
chip_gen: v5e
topology: v5e:2x2
jax: 0.10.0
libtpu: 0.0.40
codegen_flags: <defaults>
</compile_context>

<pallas_src>
import functools

import jax
import jax.numpy as jnp
from jax.experimental import pallas as pl
from jax.experimental.pallas import tpu as pltpu


def _round_up(x: int, m: int) -> int:
    return ((x + m - 1) // m) * m


# --------------------------------------------------------------------------
# Kernel body: one (tm, tn) f32 output tile, grid axis 2 iterates K tiles.
# The output block is resident across k (its index_map ignores k), so we
# accumulate directly into the f32 output ref — no scratch, no epilogue copy.
# --------------------------------------------------------------------------
def _matmul_kernel(a_ref, b_ref, o_ref):
    @pl.when(pl.program_id(2) == 0)
    def _():
        o_ref[...] = jnp.zeros_like(o_ref)

    o_ref[...] += jnp.dot(
        a_ref[...], b_ref[...], preferred_element_type=jnp.float32
    )


# --------------------------------------------------------------------------
# Hardware queries (best effort, safe defaults).
# --------------------------------------------------------------------------
def _num_tensorcores() -> int:
    """TensorCores per chip; default 1 (v5e/v6e) when unknown."""
    try:
        info = pltpu.get_tpu_info()
        for attr in ("num_cores", "core_count", "num_tensorcores", "cores_per_chip"):
            v = getattr(info, attr, None)
            if v:
                return int(v)
    except Exception:
        pass
    return 1


def _vmem_limit_bytes(tm: int, tn: int, tk: int, in_itemsize: int) -> int:
    """Scoped-VMEM cap from the actual tile footprint, safe for v7x (64 MiB/TC)."""
    # double-buffered A and B tiles + (up to) double-buffered f32 output tile
    footprint = 2 * (tm * tk + tk * tn) * in_itemsize + 2 * tm * tn * 4
    # + headroom for Mosaic's internal scratch; never exceed 56 MiB so we stay
    # comfortably under v7x's 64 MiB per-TC physical VMEM.
    return min(footprint + (24 << 20), 56 << 20)


# --------------------------------------------------------------------------
# Tiling: minimal layout-grain padding, tiles chosen to divide padded dims.
# --------------------------------------------------------------------------
def _choose_dim_tile(d: int, align: int, cap: int, candidates):
    """Return (tile, padded_dim): pad `d` minimally, tile divides padded dim."""
    dp = _round_up(d, align)
    if dp <= cap:
        # Single full-extent block along this dim: zero extra padding.
        return dp, dp
    dp = _round_up(d, 128)  # 128 is a multiple of every alignment we use
    for c in candidates:
        if dp % c == 0:
            return c, dp
    return 128, dp  # unreachable: 128 always divides dp


def _choose_tiles(M: int, N: int, K: int, op_dtype, num_cores: int):
    # bf16 packs 2 rows per sublane -> 16-row grain on the M (sublane) axis.
    m_align = 16 if op_dtype == jnp.bfloat16 else 8

    tm, Mp = _choose_dim_tile(M, m_align, 512, (512, 384, 256, 128))
    tn, Np = _choose_dim_tile(N, 128, 1024, (1024, 512, 384, 256, 128))
    tk, Kp = _choose_dim_tile(K, 128, 512, (512, 384, 256, 128))

    # Megacore split: only on chips with >=2 TensorCores (v7x), only when the
    # (M, N) grid would otherwise be a single block, and only when both halves
    # keep >= 128 MXU-filling rows at the dtype's sublane grain.
    grid_mn = (Mp // tm) * (Np // tn)
    if (num_cores >= 2 and grid_mn < 2 and tm >= 256
            and tm % (2 * m_align) == 0 and tm // 2 >= 128):
        tm //= 2
    # TODO(synk): if profiling on v7x shows plain "parallel" does not shard the
    # M axis across the 2 TCs, switch that axis to pltpu.CORE_PARALLEL.

    return tm, tn, tk, Mp, Np, Kp


# --------------------------------------------------------------------------
# forward(): equivalent of OperatorModuleWrapper.forward(a, b) for the
# canonical matmul PrimFunc.  Returns a list of outputs, like the wrapper.
# --------------------------------------------------------------------------
@functools.partial(jax.jit, static_argnames=("use_bf16_operands",))
def operator_module_forward(a: jax.Array, b: jax.Array,
                            *, use_bf16_operands: bool = False):
    M, K = a.shape
    K2, N = b.shape
    if K != K2:
        raise ValueError("inner dimensions must match")

    # Operand dtype: keep native bf16 (no wasteful upcast); otherwise f32.
    # Accumulation is always f32 (preferred_element_type below), matching the
    # f32 TVM reference numerics for f32 inputs.
    if use_bf16_operands or (a.dtype == jnp.bfloat16 and b.dtype == jnp.bfloat16):
        op_dtype = jnp.bfloat16
    else:
        op_dtype = jnp.float32
    a = a.astype(op_dtype)
    b = b.astype(op_dtype)

    num_cores = _num_tensorcores()
    tm, tn, tk, Mp, Np, Kp = _choose_tiles(M, N, K, op_dtype, num_cores)

    # Minimal zero-padding so every tile is full; padded K contributes nothing
    # to the sum, padded rows/cols are sliced off below.
    if (Mp, Kp) != (M, K):
        a = jnp.pad(a, ((0, Mp - M), (0, Kp - K)))
    if (Kp, Np) != (K, N):
        b = jnp.pad(b, ((0, Kp - K), (0, Np - N)))

    grid_m, grid_n, grid_k = Mp // tm, Np // tn, Kp // tk
    in_bytes = jnp.dtype(op_dtype).itemsize

    # HBM traffic including re-streaming of A across the N grid and B across
    # the M grid (the real DMA volume of this tiling), plus the f32 output.
    cost = pl.CostEstimate(
        flops=2 * Mp * Np * Kp,
        transcendentals=0,
        bytes_accessed=in_bytes * (Mp * Kp * grid_n + Kp * Np * grid_m)
        + 4 * Mp * Np,
    )

    out = pl.pallas_call(
        _matmul_kernel,
        out_shape=jax.ShapeDtypeStruct((Mp, Np), jnp.float32),
        grid_spec=pltpu.PrefetchScalarGridSpec(
            num_scalar_prefetch=0,
            grid=(grid_m, grid_n, grid_k),
            in_specs=[
                pl.BlockSpec((tm, tk), lambda i, j, k: (i, k)),
                pl.BlockSpec((tk, tn), lambda i, j, k: (k, j)),
            ],
            out_specs=pl.BlockSpec((tm, tn), lambda i, j, k: (i, j)),
        ),
        compiler_params=pltpu.CompilerParams(
            dimension_semantics=("parallel", "parallel", "arbitrary"),
            vmem_limit_bytes=_vmem_limit_bytes(tm, tn, tk, in_bytes),
        ),
        cost_estimate=cost,
    )(a, b)

    if (Mp, Np) != (M, N):
        out = out[:M, :N]
    # The TVM wrapper returns a list of output tensors; mirror that.
    return [out]


if __name__ == "__main__":
    key = jax.random.PRNGKey(0)
    ka, kb, kc, kd = jax.random.split(key, 4)

    # 1) Aligned small shapes (canonical as_torch matmul example).
    M, K, N = 128, 256, 128
    a = jax.random.normal(ka, (M, K), dtype=jnp.float32)
    b = jax.random.normal(kb, (K, N), dtype=jnp.float32)
    (c,) = operator_module_forward(a, b)
    c = jax.block_until_ready(c)
    ref = a @ b
    assert c.shape == (M, N) and c.dtype == jnp.float32
    assert jnp.allclose(c, ref, atol=1e-3, rtol=1e-3)

    # 2) Ragged shapes — exercises the minimal-padding / divisor-tile path
    #    that the real TVM operator would also accept.
    M2, K2, N2 = 96, 200, 136
    a2 = jax.random.normal(kc, (M2, K2), dtype=jnp.float32)
    b2 = jax.random.normal(kd, (K2, N2), dtype=jnp.float32)
    (c2,) = operator_module_forward(a2, b2)
    c2 = jax.block_until_ready(c2)
    ref2 = a2 @ b2
    assert c2.shape == (M2, N2) and c2.dtype == jnp.float32
    assert jnp.allclose(c2, ref2, atol=1e-3, rtol=1e-3)

    # TODO(synk): the wrapper's tune()/build()/script() (MetaSchedule
    # autotuning of the TIR module + TVM runtime build) have no Pallas
    # equivalent; only forward() semantics are reproduced here.
    print("KERNEL_OK")
</pallas_src>

<mosaic_0001>
module attributes {stable_mosaic.version = 11 : i64} {
  func.func @_matmul_kernel(%arg0: i32, %arg1: i32, %arg2: i32, %arg3: memref<128x256xf32, #tpu.memory_space<vmem>>, %arg4: memref<256x128xf32, #tpu.memory_space<vmem>>, %arg5: memref<128x128xf32, #tpu.memory_space<vmem>>) attributes {dimension_semantics = [#tpu.dimension_semantics<parallel>, #tpu.dimension_semantics<parallel>, #tpu.dimension_semantics<arbitrary>], iteration_bounds = array<i64: 1, 1, 1>, scalar_prefetch = 0 : i64, scratch_operands = 0 : i64, tpu.core_type = #tpu.core_type<tc>, window_params = [{transform_indices = @transform_0, window_bounds = array<i64: 128, 256>}, {transform_indices = @transform_1, window_bounds = array<i64: 256, 128>}, {transform_indices = @transform_2, window_bounds = array<i64: 128, 128>}]} {
    %c0_i32 = arith.constant 0 : i32
    %0 = arith.cmpi eq, %arg2, %c0_i32 : i32
    %1 = arith.extui %0 : i1 to i32
    %c0_i32_0 = arith.constant 0 : i32
    %2 = arith.cmpi ne, %1, %c0_i32_0 : i32
    scf.if %2 {
      %cst_8 = arith.constant 0.000000e+00 : f32
      %9 = vector.broadcast %cst_8 : f32 to vector<128x128xf32>
      %c0_9 = arith.constant 0 : index
      %c0_10 = arith.constant 0 : index
      %10 = vector.load %arg5[%c0_9, %c0_10] : memref<128x128xf32, #tpu.memory_space<vmem>>, vector<128x128xf32>
      tpu.vector_store %arg5[%c0_9, %c0_10], %9 {strides = array<i32>} : memref<128x128xf32, #tpu.memory_space<vmem>>, vector<128x128xf32>,
    } else {
    }
    %c0 = arith.constant 0 : index
    %c0_1 = arith.constant 0 : index
    %3 = vector.load %arg5[%c0, %c0_1] : memref<128x128xf32, #tpu.memory_space<vmem>>, vector<128x128xf32>
    %c0_2 = arith.constant 0 : index
    %c0_3 = arith.constant 0 : index
    %4 = vector.load %arg3[%c0_2, %c0_3] : memref<128x256xf32, #tpu.memory_space<vmem>>, vector<128x256xf32>
    %c0_4 = arith.constant 0 : index
    %c0_5 = arith.constant 0 : index
    %5 = vector.load %arg4[%c0_4, %c0_5] : memref<256x128xf32, #tpu.memory_space<vmem>>, vector<256x128xf32>
    %cst = arith.constant dense<0.000000e+00> : vector<128x128xf32>
    %6 = tpu.matmul %4, %5, %cst {dimension_numbers = #tpu.dot_dimension_numbers<[1], [0], [0], [1], [0, 0, 1, 1], [], []>} : vector<128x256xf32>, vector<256x128xf32>, vector<128x128xf32> -> vector<128x128xf32>
    %7 = arith.addf %3, %6 : vector<128x128xf32>
    %c0_6 = arith.constant 0 : index
    %c0_7 = arith.constant 0 : index
    %8 = vector.load %arg5[%c0_6, %c0_7] : memref<128x128xf32, #tpu.memory_space<vmem>>, vector<128x128xf32>
    tpu.vector_store %arg5[%c0_6, %c0_7], %7 {strides = array<i32>} : memref<128x128xf32, #tpu.memory_space<vmem>>, vector<128x128xf32>,
    return
  }
  func.func @transform_0(%arg0: i32, %arg1: i32, %arg2: i32) -> (i32, i32) {
    %c0_i32 = arith.constant 0 : i32
    return %arg0, %arg2 : i32, i32
  }
  func.func @transform_1(%arg0: i32, %arg1: i32, %arg2: i32) -> (i32, i32) {
    %c0_i32 = arith.constant 0 : i32
    return %arg2, %arg1 : i32, i32
  }
  func.func @transform_2(%arg0: i32, %arg1: i32, %arg2: i32) -> (i32, i32) {
    %c0_i32 = arith.constant 0 : i32
    return %arg0, %arg1 : i32, i32
  }
}

</mosaic_0001>

<bundles_post_ra>
// kernel: operator_module_forward.1
= control target key start
LH: loop header
LB: loop body
LE: loop exit
PB: predicated region body
PF: predicated region fallthrough
CT: control target
= control target key end

     0   :  { %7 = vsyncpa [#allocation3], 0  ;;  %s481_s0 = inlined_call_operand.hbm [shape: f32[128,256], index: 0, kind: input, shape index: {}]   ;;  %s482_s1 = inlined_call_operand.hbm [shape: f32[256,128], index: 1, kind: input, shape index: {}]   ;;  %s483_s2 = inlined_call_operand.hbm [shape: f32[128,128], index: 2, kind: output, shape index: {}]  }
   0x1   :  { %8 = vsyncpa [#allocation6], 0 }
   0x2   :  { %9 = vsyncpa [#allocation4], 0  ;;  %s14_s11 = sshll.u32 %s481_s0, 4  ;;  %s444_s12 = smov [#allocation2]   ;;  %s15_s11 = int_to_ptr.hbm [resolvable:$true] %s14_s11 }
   0x3   :  { %s16_s13 = sshll.u32 %s444_s12, 4  ;;  %s27_s16 = sshll.u32 %s482_s1, 4  ;;  %s17_s13 = int_to_ptr.vmem [resolvable:$true] %s16_s13  ;;  %s28_s16 = int_to_ptr.hbm [resolvable:$true] %s27_s16 }
   0x4   :  { %s445_s17 = smov 256   ;;  %s446_s18 = smov 16  }
   0x5   :  { %22 = dma.hbm_to_vmem [thread:$0]  %s15_s11, 4096, %s17_s13, [#allocation3], %s445_s17, %s445_s17, %s446_s18  }
   0x6   :  { %s447_s19 = smov [#allocation5]   ;;  %s448_s21 = smov 128  }
   0x7   :  { %s29_s20 = sshll.u32 %s447_s19, 4  ;;  %s449_s22 = smov 8   ;;  %s30_s20 = int_to_ptr.vmem [resolvable:$true] %s29_s20 }
   0x8   :  { %35 = dma.hbm_to_vmem [thread:$0]  %s28_s16, 4096, %s30_s20, [#allocation6], %s448_s21, %s448_s21, %s449_s22  }
   0x9   :  { %438 = dma.done.wait [#allocation3], 4096  }
   0xa   :  { %439 = vsyncadd [#allocation3], 4294963200 }
   0xb   :  { %440 = dma.done.wait [#allocation6], 4096  }
   0xc   :  { %441 = vsyncadd [#allocation6], 4294963200  ;;  %v127_v0 = vld [vmem:[#allocation5 + $0x78] sm:$0xff]  ;;  %v126_v2 = vld [vmem:[#allocation5 + $0x70] sm:$0xff]  ;;  %s450_s0 = smov [#allocation7]   ;;  %s312_s25 = sshll.u32 %s483_s2, 4  ;;  %s313_s25 = int_to_ptr.hbm [resolvable:$true] %s312_s25 }
   0xd   :  { %v143_v1 = vld [vmem:[#allocation5 + $0xf8] sm:$0xff]  ;;  %326 = vmatpush.msra.mxu2 %v127_v0  ;;  %v142_v3 = vld [vmem:[#allocation5 + $0xf0] sm:$0xff]  ;;  %v125_v4 = vld [vmem:[#allocation5 + $0x68] sm:$0xff]  ;;  %144 = vmatpush.msra.mxu0 %v127_v0  ;;  %s310_s1 = sshll.u32 %s450_s0, 4  ;;  %s311_s1 = int_to_ptr.vmem [resolvable:$true] %s310_s1 }
   0xe   :  { %342 = vmatpush.msra.mxu3 %v143_v1  ;;  %v141_v5 = vld [vmem:[#allocation5 + $0xe8] sm:$0xff]  ;;  %209 = vmatpush.msra.mxu1 %v143_v1  ;;  %v124_v6 = vld [vmem:[#allocation5 + $0x60] sm:$0xff]  ;;  %v123_v8 = vld [vmem:[#allocation5 + $0x58] sm:$0xff] }
   0xf   :  { %327 = vmatpush.msra.mxu2 %v126_v2  ;;  %v140_v7 = vld [vmem:[#allocation5 + $0xe0] sm:$0xff]  ;;  %145 = vmatpush.msra.mxu0 %v126_v2  ;;  %v139_v9 = vld [vmem:[#allocation5 + $0xd8] sm:$0xff]  ;;  %v122_v10 = vld [vmem:[#allocation5 + $0x50] sm:$0xff] }
  0x10   :  { %343 = vmatpush.msra.mxu3 %v142_v3  ;;  %210 = vmatpush.msra.mxu1 %v142_v3  ;;  %v138_v11 = vld [vmem:[#allocation5 + $0xd0] sm:$0xff]  ;;  %v121_v12 = vld [vmem:[#allocation5 + $0x48] sm:$0xff]  ;;  %v120_v14 = vld [vmem:[#allocation5 + $0x40] sm:$0xff] }
  0x11   :  { %328 = vmatpush.msra.mxu2 %v125_v4  ;;  %146 = vmatpush.msra.mxu0 %v125_v4  ;;  %v137_v13 = vld [vmem:[#allocation5 + $0xc8] sm:$0xff]  ;;  %v136_v15 = vld [vmem:[#allocation5 + $0xc0] sm:$0xff]  ;;  %v119_v16 = vld [vmem:[#allocation5 + $0x38] sm:$0xff] }
  0x12   :  { %344 = vmatpush.msra.mxu3 %v141_v5  ;;  %211 = vmatpush.msra.mxu1 %v141_v5  ;;  %v135_v17 = vld [vmem:[#allocation5 + $0xb8] sm:$0xff]  ;;  %v118_v18 = vld [vmem:[#allocation5 + $0x30] sm:$0xff]  ;;  %v117_v20 = vld [vmem:[#allocation5 + $0x28] sm:$0xff] }
  0x13   :  { %329 = vmatpush.msra.mxu2 %v124_v6  ;;  %147 = vmatpush.msra.mxu0 %v124_v6  ;;  %v134_v19 = vld [vmem:[#allocation5 + $0xb0] sm:$0xff]  ;;  %v133_v21 = vld [vmem:[#allocation5 + $0xa8] sm:$0xff]  ;;  %v116_v22 = vld [vmem:[#allocation5 + $0x20] sm:$0xff] }
  0x14   :  { %345 = vmatpush.msra.mxu3 %v140_v7  ;;  %212 = vmatpush.msra.mxu1 %v140_v7  ;;  %v132_v23 = vld [vmem:[#allocation5 + $0xa0] sm:$0xff]  ;;  %v115_v24 = vld [vmem:[#allocation5 + $0x18] sm:$0xff]  ;;  %v114_v26 = vld [vmem:[#allocation5 + $0x10] sm:$0xff] }
  0x15   :  { %330 = vmatpush.msra.mxu2 %v123_v8  ;;  %148 = vmatpush.msra.mxu0 %v123_v8  ;;  %v131_v25 = vld [vmem:[#allocation5 + $0x98] sm:$0xff]  ;;  %v130_v27 = vld [vmem:[#allocation5 + $0x90] sm:$0xff]  ;;  %v113_v28 = vld [vmem:[#allocation5 + $0x8] sm:$0xff] }
  0x16   :  { %346 = vmatpush.msra.mxu3 %v139_v9  ;;  %213 = vmatpush.msra.mxu1 %v139_v9  ;;  %v129_v29 = vld [vmem:[#allocation5 + $0x88] sm:$0xff]  ;;  %v112_v30 = vld [vmem:[#allocation5] sm:$0xff]  ;;  %v98_v36 = vld [vmem:[#allocation2 + $0x90] sm:$0xff] }
  0x17   :  { %331 = vmatpush.msra.mxu2 %v122_v10  ;;  %149 = vmatpush.msra.mxu0 %v122_v10  ;;  %v128_v31 = vld [vmem:[#allocation5 + $0x80] sm:$0xff]  ;;  %v97_v33 = vld [vmem:[#allocation2 + $0x88] sm:$0xff]  ;;  %v99_v37 = vld [vmem:[#allocation2 + $0x98] sm:$0xff] }
  0x18   :  { %347 = vmatpush.msra.mxu3 %v138_v11  ;;  %214 = vmatpush.msra.mxu1 %v138_v11  ;;  %v96_v32 = vld [vmem:[#allocation2 + $0x80] sm:$0xff]  ;;  %v81_v35 = vld [vmem:[#allocation2 + $0x8] sm:$0xff]  ;;  %v82_v38 = vld [vmem:[#allocation2 + $0x10] sm:$0xff] }
  0x19   :  { %332 = vmatpush.msra.mxu2 %v121_v12  ;;  %150 = vmatpush.msra.mxu0 %v121_v12  ;;  %v80_v34 = vld [vmem:[#allocation2] sm:$0xff]  ;;  %v83_v39 = vld [vmem:[#allocation2 + $0x18] sm:$0xff]  ;;  %v101_v41 = vld [vmem:[#allocation2 + $0xa8] sm:$0xff] }
  0x1a   :  { %348 = vmatpush.msra.mxu3 %v137_v13  ;;  %215 = vmatpush.msra.mxu1 %v137_v13  ;;  %v100_v40 = vld [vmem:[#allocation2 + $0xa0] sm:$0xff]  ;;  %v85_v43 = vld [vmem:[#allocation2 + $0x28] sm:$0xff]  ;;  %v102_v44 = vld [vmem:[#allocation2 + $0xb0] sm:$0xff] }
  0x1b   :  { %333 = vmatpush.msra.mxu2 %v120_v14  ;;  %151 = vmatpush.msra.mxu0 %v120_v14  ;;  %v84_v42 = vld [vmem:[#allocation2 + $0x20] sm:$0xff]  ;;  %v103_v45 = vld [vmem:[#allocation2 + $0xb8] sm:$0xff]  ;;  %v86_v46 = vld [vmem:[#allocation2 + $0x30] sm:$0xff] }
  0x1c   :  { %349 = vmatpush.msra.mxu3 %v136_v15  ;;  %216 = vmatpush.msra.mxu1 %v136_v15  ;;  %v87_v47 = vld [vmem:[#allocation2 + $0x38] sm:$0xff]  ;;  %v104_v48 = vld [vmem:[#allocation2 + $0xc0] sm:$0xff]  ;;  %v105_v49 = vld [vmem:[#allocation2 + $0xc8] sm:$0xff] }
  0x1d   :  { %334 = vmatpush.msra.mxu2 %v119_v16  ;;  %152 = vmatpush.msra.mxu0 %v119_v16  ;;  %v88_v50 = vld [vmem:[#allocation2 + $0x40] sm:$0xff]  ;;  %v89_v51 = vld [vmem:[#allocation2 + $0x48] sm:$0xff]  ;;  %v106_v52 = vld [vmem:[#allocation2 + $0xd0] sm:$0xff] }
  0x1e   :  { %350 = vmatpush.msra.mxu3 %v135_v17  ;;  %217 = vmatpush.msra.mxu1 %v135_v17  ;;  %v107_v53 = vld [vmem:[#allocation2 + $0xd8] sm:$0xff]  ;;  %v90_v54 = vld [vmem:[#allocation2 + $0x50] sm:$0xff]  ;;  %v108_v56 = vld [vmem:[#allocation2 + $0xe0] sm:$0xff] }
  0x1f   :  { %335 = vmatpush.msra.mxu2 %v118_v18  ;;  %153 = vmatpush.msra.mxu0 %v118_v18  ;;  %v91_v55 = vld [vmem:[#allocation2 + $0x58] sm:$0xff]  ;;  %v109_v57 = vld [vmem:[#allocation2 + $0xe8] sm:$0xff]  ;;  %v92_v58 = vld [vmem:[#allocation2 + $0x60] sm:$0xff] }
  0x20   :  { %351 = vmatpush.msra.mxu3 %v134_v19  ;;  %218 = vmatpush.msra.mxu1 %v134_v19  ;;  %v93_v59 = vld [vmem:[#allocation2 + $0x68] sm:$0xff]  ;;  %v110_v60 = vld [vmem:[#allocation2 + $0xf0] sm:$0xff]  ;;  %v111_v61 = vld [vmem:[#allocation2 + $0xf8] sm:$0xff] }
  0x21   :  { %336 = vmatpush.msra.mxu2 %v117_v20  ;;  %154 = vmatpush.msra.mxu0 %v117_v20  ;;  %v94_v62 = vld [vmem:[#allocation2 + $0x70] sm:$0xff]  ;;  %v95_v63 = vld [vmem:[#allocation2 + $0x78] sm:$0xff] }
  0x22   :  { %352 = vmatpush.msra.mxu3 %v133_v21  ;;  %219 = vmatpush.msra.mxu1 %v133_v21 }
  0x23   :  { %337 = vmatpush.msra.mxu2 %v116_v22  ;;  %155 = vmatpush.msra.mxu0 %v116_v22 }
  0x24   :  { %353 = vmatpush.msra.mxu3 %v132_v23  ;;  %220 = vmatpush.msra.mxu1 %v132_v23 }
  0x25   :  { %338 = vmatpush.msra.mxu2 %v115_v24  ;;  %156 = vmatpush.msra.mxu0 %v115_v24 }
  0x26   :  { %354 = vmatpush.msra.mxu3 %v131_v25  ;;  %221 = vmatpush.msra.mxu1 %v131_v25 }
  0x27   :  { %339 = vmatpush.msra.mxu2 %v114_v26  ;;  %157 = vmatpush.msra.mxu0 %v114_v26 }
  0x28   :  { %355 = vmatpush.msra.mxu3 %v130_v27  ;;  %222 = vmatpush.msra.mxu1 %v130_v27 }
  0x29   :  { %340 = vmatpush.msra.mxu2 %v113_v28  ;;  %158 = vmatpush.msra.mxu0 %v113_v28 }
  0x2a   :  { %356 = vmatpush.msra.mxu3 %v129_v29  ;;  %223 = vmatpush.msra.mxu1 %v129_v29 }
  0x2b   :  { %341 = vmatpush.msra.mxu2 %v112_v30  ;;  %159 = vmatpush.msra.mxu0 %v112_v30 }
  0x2c   :  { %357 = vmatpush.msra.mxu3 %v128_v31  ;;  %184 = vmatmul.f32.vlgmr.msra.gmra.mxu2 %v96_v32 }
  0x2d   :  { %249 = vmatmul.f32.vlgmr.msra.gmra.mxu3 %v97_v33  ;;  %224 = vmatpush.msra.mxu1 %v128_v31 }
  0x2e   :  { %160 = vmatmul.f32.vlgmr.msra.gmra.mxu0 %v80_v34  ;;  %225 = vmatmul.f32.vlgmr.msra.gmra.mxu1 %v81_v35 }
  0x34   :  { %187 = vmatmul.f32.gmra.mxu2 %v98_v36 }
  0x35   :  { %252 = vmatmul.f32.gmra.mxu3 %v99_v37 }
  0x36   :  { %163 = vmatmul.f32.gmra.mxu0 %v82_v38  ;;  %228 = vmatmul.f32.gmra.mxu1 %v83_v39 }
  0x3c   :  { %190 = vmatmul.f32.gmra.mxu2 %v100_v40 }
  0x3d   :  { %255 = vmatmul.f32.gmra.mxu3 %v101_v41 }
  0x3e   :  { %166 = vmatmul.f32.gmra.mxu0 %v84_v42  ;;  %231 = vmatmul.f32.gmra.mxu1 %v85_v43 }
  0x44   :  { %193 = vmatmul.f32.gmra.mxu2 %v102_v44 }
  0x45   :  { %258 = vmatmul.f32.gmra.mxu3 %v103_v45 }
  0x46   :  { %169 = vmatmul.f32.gmra.mxu0 %v86_v46  ;;  %234 = vmatmul.f32.gmra.mxu1 %v87_v47 }
  0x4c   :  { %196 = vmatmul.f32.gmra.mxu2 %v104_v48 }
  0x4d   :  { %261 = vmatmul.f32.gmra.mxu3 %v105_v49 }
  0x4e   :  { %172 = vmatmul.f32.gmra.mxu0 %v88_v50  ;;  %237 = vmatmul.f32.gmra.mxu1 %v89_v51 }
  0x54   :  { %199 = vmatmul.f32.gmra.mxu2 %v106_v52 }
  0x55   :  { %264 = vmatmul.f32.gmra.mxu3 %v107_v53 }
  0x56   :  { %175 = vmatmul.f32.gmra.mxu0 %v90_v54  ;;  %240 = vmatmul.f32.gmra.mxu1 %v91_v55 }
  0x5c   :  { %202 = vmatmul.f32.gmra.mxu2 %v108_v56 }
  0x5d   :  { %267 = vmatmul.f32.gmra.mxu3 %v109_v57 }
  0x5e   :  { %178 = vmatmul.f32.gmra.mxu0 %v92_v58  ;;  %243 = vmatmul.f32.gmra.mxu1 %v93_v59 }
  0x64   :  { %205 = vmatmul.f32.gmra.mxu2 %v110_v60 }
  0x65   :  { %270 = vmatmul.f32.gmra.mxu3 %v111_v61 }
  0x66   :  { %181 = vmatmul.f32.gmra.mxu0 %v94_v62  ;;  %246 = vmatmul.f32.gmra.mxu1 %v95_v63 }
  0xab   :  { %v161_v0 = vpop.f32.mrf.mxu0  ;;  %v226_v1 = vpop.f32.mrf.mxu1 }
  0xac   :  { %v227_v2 = vadd.f32 %v226_v1, %v161_v0 }
  0xae   :  { %290 = vst [vmem:[#allocation7] sm:$0xff] %v227_v2 }
  0xaf   :  { %v185_v3 = vpop.f32.mrf.mxu2 }
  0xb0   :  { %v250_v4 = vpop.f32.mrf.mxu3 }
  0xb1   :  { %v251_v5 = vadd.f32 %v250_v4, %v185_v3 }
  0xb3   :  { %v164_v6 = vpop.f32.mrf.mxu0  ;;  %v229_v7 = vpop.f32.mrf.mxu1  ;;  %298 = vst [vmem:[#allocation7 + $0x40] sm:$0xff] %v251_v5 }
  0xb4   :  { %v230_v8 = vadd.f32 %v229_v7, %v164_v6 }
  0xb6   :  { %291 = vst [vmem:[#allocation7 + $0x8] sm:$0xff] %v230_v8 }
  0xb7   :  { %v188_v9 = vpop.f32.mrf.mxu2 }
  0xb8   :  { %v253_v10 = vpop.f32.mrf.mxu3 }
  0xb9   :  { %v254_v11 = vadd.f32 %v253_v10, %v188_v9 }
  0xbb   :  { %v167_v12 = vpop.f32.mrf.mxu0  ;;  %v232_v13 = vpop.f32.mrf.mxu1  ;;  %299 = vst [vmem:[#allocation7 + $0x48] sm:$0xff] %v254_v11 }
  0xbc   :  { %v233_v14 = vadd.f32 %v232_v13, %v167_v12 }
  0xbe   :  { %292 = vst [vmem:[#allocation7 + $0x10] sm:$0xff] %v233_v14 }
  0xbf   :  { %v191_v15 = vpop.f32.mrf.mxu2 }
  0xc0   :  { %v256_v16 = vpop.f32.mrf.mxu3 }
  0xc1   :  { %v257_v17 = vadd.f32 %v256_v16, %v191_v15 }
  0xc3   :  { %v170_v18 = vpop.f32.mrf.mxu0  ;;  %v235_v19 = vpop.f32.mrf.mxu1  ;;  %300 = vst [vmem:[#allocation7 + $0x50] sm:$0xff] %v257_v17 }
  0xc4   :  { %v236_v20 = vadd.f32 %v235_v19, %v170_v18 }
  0xc6   :  { %293 = vst [vmem:[#allocation7 + $0x18] sm:$0xff] %v236_v20 }
  0xc7   :  { %v194_v21 = vpop.f32.mrf.mxu2 }
  0xc8   :  { %v259_v22 = vpop.f32.mrf.mxu3 }
  0xc9   :  { %v260_v23 = vadd.f32 %v259_v22, %v194_v21 }
  0xcb   :  { %v173_v24 = vpop.f32.mrf.mxu0  ;;  %v238_v25 = vpop.f32.mrf.mxu1  ;;  %301 = vst [vmem:[#allocation7 + $0x58] sm:$0xff] %v260_v23 }
  0xcc   :  { %v239_v26 = vadd.f32 %v238_v25, %v173_v24 }
  0xce   :  { %294 = vst [vmem:[#allocation7 + $0x20] sm:$0xff] %v239_v26 }
  0xcf   :  { %v197_v27 = vpop.f32.mrf.mxu2 }
  0xd0   :  { %v262_v28 = vpop.f32.mrf.mxu3 }
  0xd1   :  { %v263_v29 = vadd.f32 %v262_v28, %v197_v27 }
  0xd3   :  { %v176_v30 = vpop.f32.mrf.mxu0  ;;  %v241_v31 = vpop.f32.mrf.mxu1  ;;  %302 = vst [vmem:[#allocation7 + $0x60] sm:$0xff] %v263_v29 }
  0xd4   :  { %v242_v32 = vadd.f32 %v241_v31, %v176_v30 }
  0xd6   :  { %295 = vst [vmem:[#allocation7 + $0x28] sm:$0xff] %v242_v32 }
  0xd7   :  { %v200_v33 = vpop.f32.mrf.mxu2 }
  0xd8   :  { %v265_v34 = vpop.f32.mrf.mxu3 }
  0xd9   :  { %v266_v35 = vadd.f32 %v265_v34, %v200_v33 }
  0xdb   :  { %v179_v36 = vpop.f32.mrf.mxu0  ;;  %v244_v37 = vpop.f32.mrf.mxu1  ;;  %303 = vst [vmem:[#allocation7 + $0x68] sm:$0xff] %v266_v35 }
  0xdc   :  { %v245_v38 = vadd.f32 %v244_v37, %v179_v36 }
  0xde   :  { %296 = vst [vmem:[#allocation7 + $0x30] sm:$0xff] %v245_v38 }
  0xdf   :  { %v203_v39 = vpop.f32.mrf.mxu2 }
  0xe0   :  { %v268_v40 = vpop.f32.mrf.mxu3 }
  0xe1   :  { %v269_v41 = vadd.f32 %v268_v40, %v203_v39 }
  0xe3   :  { %v182_v42 = vpop.f32.mrf.mxu0  ;;  %v247_v43 = vpop.f32.mrf.mxu1  ;;  %304 = vst [vmem:[#allocation7 + $0x70] sm:$0xff] %v269_v41 }
  0xe4   :  { %v248_v44 = vadd.f32 %v247_v43, %v182_v42 }
  0xe6   :  { %297 = vst [vmem:[#allocation7 + $0x38] sm:$0xff] %v248_v44 }
  0xe7   :  { %v206_v45 = vpop.f32.mrf.mxu2 }
  0xe8   :  { %v271_v46 = vpop.f32.mrf.mxu3 }
  0xe9   :  { %v272_v47 = vadd.f32 %v271_v46, %v206_v45 }
  0xeb   :  { %305 = vst [vmem:[#allocation7 + $0x78] sm:$0xff] %v272_v47 }
  0xec   :  { %318 = dma.vmem_to_hbm [thread:$0]  %s311_s1, 2048, %s313_s25, [#allocation4], %s448_s21, %s448_s21, %s449_s22  }
  0xed   :  { %442 = dma.done.wait [#allocation4], 2048  }
  0xee   :  { %443 = vsyncadd [#allocation4], 4294965248 }
  0xef   :  { %323 = vsyncpa [#allocation3], 1 }
  0xf0   :  { %324 = vsyncpa [#allocation6], 1 }
  0xf1   :  { %325 = vsyncpa [#allocation4], 1 }

</bundles_post_ra>
